<compile_context>
chip_gen: v7x
topology: tpu7x:2x2x1
jax: 0.10.0
libtpu: 0.0.40
codegen_flags: <defaults>
</compile_context>

<pallas_src>
import functools

import jax
import jax.numpy as jnp
from jax.experimental import pallas as pl
from jax.experimental.pallas import tpu as pltpu

EPS = 1e-05


def _stats_pool_kernel(x_ref, noise_ref, mean_ref, std_ref, sum_sc, sumsq_sc,
                       *, tt, t_total, mask_needed):
    t = pl.program_id(1)

    @pl.when(t == 0)
    def _():
        sum_sc[...] = jnp.zeros_like(sum_sc)
        sumsq_sc[...] = jnp.zeros_like(sumsq_sc)

    # TODO(synk): for bf16 inputs on v5e, fold the f32 cast into the reduction
    # instead of materializing the full f32 tile (secondary; kernel is HBM-bound).
    x = x_ref[...].astype(jnp.float32)                       # (TB, TT, F)

    if mask_needed:  # static Python branch: only emitted when T % TT != 0
        tid = t * tt + jax.lax.broadcasted_iota(jnp.int32, x.shape, 1)
        x = jnp.where(tid < t_total, x, 0.0)

    sum_sc[...] += jnp.sum(x, axis=1)                        # (TB, F)
    sumsq_sc[...] += jnp.sum(x * x, axis=1)                  # (TB, F)

    @pl.when(t == pl.num_programs(1) - 1)
    def _():
        inv_t = 1.0 / t_total
        mean = sum_sc[...] * inv_t                           # (TB, F)
        # Unbiased variance (ddof=1), accumulated in f32 to avoid cancellation.
        # (T==1 would be NaN in torch; guarded here only to avoid a trace-time
        #  zero-division -- semantics otherwise identical.)
        var = (sumsq_sc[...] * inv_t - mean * mean) * (t_total / max(t_total - 1, 1))
        std = jnp.sqrt(jnp.maximum(var, 0.0))
        mean_ref[...] = (mean[:, None, :] + noise_ref[...]).astype(mean_ref.dtype)
        std_ref[...] = (std[:, None, :] + EPS).astype(std_ref.dtype)


def _choose_tiles(B, T, F, itemsize, vmem_budget_bytes=24 * 1024 * 1024):
    # Batch tile: largest divisor of B up to 8 (leading dim, no layout constraint).
    TB = 1
    for cand in range(min(B, 8), 0, -1):
        if B % cand == 0:
            TB = cand
            break
    # Time tile: whole T if it fits the double-buffer budget, else a multiple of 8.
    max_tt = max(8, vmem_budget_bytes // (2 * TB * F * itemsize))
    if T <= max_tt:
        TT = T
    else:
        TT = max(8, (max_tt // 8) * 8)
    return TB, TT


def statistics_pooling(x, key, return_mean=True, return_std=True, tb=None, tt=None):
    """Pallas implementation of StatisticsPooling.forward with lengths=None."""
    assert return_mean and return_std, "kernel implements the default (mean+std) config"
    B, T, F = x.shape

    # Gaussian noise (matches _get_gauss_noise): randn -> shift/scale to [0,1]
    # -> eps * ((1-9)*g + 9); added to the mean.
    gn = jax.random.normal(key, (B, F), dtype=jnp.float32)
    gn = gn - jnp.min(gn)
    gn = gn / jnp.max(gn)
    gnoise = (EPS * ((1 - 9) * gn + 9)).reshape(B, 1, F)

    TB, TT = _choose_tiles(B, T, F, x.dtype.itemsize)
    if tb is not None:
        TB = tb
    if tt is not None:
        TT = tt
    nb = B // TB
    nt = pl.cdiv(T, TT)
    mask_needed = (nt * TT) != T

    in_tile_bytes = TB * TT * F * x.dtype.itemsize
    vmem_limit = int(min(64 * 2**20, max(16 * 2**20, 4 * in_tile_bytes + (4 << 20))))

    kernel = functools.partial(
        _stats_pool_kernel, tt=TT, t_total=T, mask_needed=mask_needed)

    mean_out, std_out = pl.pallas_call(
        kernel,
        out_shape=(jax.ShapeDtypeStruct((B, 1, F), x.dtype),
                   jax.ShapeDtypeStruct((B, 1, F), x.dtype)),
        grid_spec=pltpu.PrefetchScalarGridSpec(
            num_scalar_prefetch=0,
            grid=(nb, nt),
            in_specs=[
                pl.BlockSpec((TB, TT, F), lambda b, t: (b, t, 0)),
                pl.BlockSpec((TB, 1, F), lambda b, t: (b, 0, 0)),
            ],
            out_specs=[
                pl.BlockSpec((TB, 1, F), lambda b, t: (b, 0, 0)),
                pl.BlockSpec((TB, 1, F), lambda b, t: (b, 0, 0)),
            ],
            scratch_shapes=[
                pltpu.VMEM((TB, F), jnp.float32),
                pltpu.VMEM((TB, F), jnp.float32),
            ],
        ),
        compiler_params=pltpu.CompilerParams(
            dimension_semantics=("parallel", "arbitrary"),
            vmem_limit_bytes=vmem_limit,
        ),
    )(x, gnoise)

    # Lane-dense concat done outside the kernel (free layout plumbing).
    return jnp.concatenate([mean_out, std_out], axis=-1)     # (B, 1, 2F)


def _reference(x, key):
    B, T, F = x.shape
    gn = jax.random.normal(key, (B, F), dtype=jnp.float32)
    gn = gn - jnp.min(gn)
    gn = gn / jnp.max(gn)
    gnoise = EPS * ((1 - 9) * gn + 9)
    mean = jnp.mean(x, axis=1) + gnoise
    std = jnp.std(x, axis=1, ddof=1) + EPS
    return jnp.concatenate([mean, std], axis=1)[:, None, :]


if __name__ == "__main__":
    key = jax.random.PRNGKey(0)

    # Test 1: small shape, single tile (nt == 1).
    kx, knoise = jax.random.split(key)
    B, T, F = 2, 8, 32
    x = jax.random.normal(kx, (B, T, F), dtype=jnp.float32)
    out = jax.block_until_ready(statistics_pooling(x, knoise))
    ref = _reference(x, knoise)
    assert out.shape == (B, 1, 2 * F), out.shape
    assert jnp.allclose(out, ref, atol=1e-5, rtol=1e-4), float(jnp.max(jnp.abs(out - ref)))

    # Test 2: forced small tiles to exercise the tiled reduction path
    # (nb=2, nt=3, masked partial last T tile).
    kx2, knoise2 = jax.random.split(jax.random.PRNGKey(0), 2)
    B2, T2, F2 = 4, 20, 32
    x2 = jax.random.normal(kx2, (B2, T2, F2), dtype=jnp.float32)
    out2 = jax.block_until_ready(statistics_pooling(x2, knoise2, tb=2, tt=8))
    ref2 = _reference(x2, knoise2)
    assert out2.shape == (B2, 1, 2 * F2), out2.shape
    assert jnp.allclose(out2, ref2, atol=1e-5, rtol=1e-4), float(jnp.max(jnp.abs(out2 - ref2)))

    print("KERNEL_OK")
</pallas_src>

<mosaic_0001>
module attributes {stable_mosaic.version = 11 : i64} {
  func.func @_stats_pool_kernel(%arg0: i32, %arg1: i32, %arg2: memref<2x8x32xf32, #tpu.memory_space<vmem>>, %arg3: memref<2x1x32xf32, #tpu.memory_space<vmem>>, %arg4: memref<2x1x32xf32, #tpu.memory_space<vmem>>, %arg5: memref<2x1x32xf32, #tpu.memory_space<vmem>>, %arg6: memref<2x32xf32, #tpu.memory_space<vmem>>, %arg7: memref<2x32xf32, #tpu.memory_space<vmem>>) attributes {dimension_semantics = [#tpu.dimension_semantics<parallel>, #tpu.dimension_semantics<arbitrary>], iteration_bounds = array<i64: 1, 1>, scalar_prefetch = 0 : i64, scratch_operands = 2 : i64, tpu.core_type = #tpu.core_type<tc>, window_params = [{transform_indices = @transform_0, window_bounds = array<i64: 2, 8, 32>}, {transform_indices = @transform_1, window_bounds = array<i64: 2, 1, 32>}, {transform_indices = @transform_2, window_bounds = array<i64: 2, 1, 32>}, {transform_indices = @transform_3, window_bounds = array<i64: 2, 1, 32>}]} {
    %c0_i32 = arith.constant 0 : i32
    %0 = arith.cmpi eq, %arg1, %c0_i32 : i32
    %1 = arith.extui %0 : i1 to i32
    %c0_i32_0 = arith.constant 0 : i32
    %2 = arith.cmpi ne, %1, %c0_i32_0 : i32
    scf.if %2 {
      %cst_14 = arith.constant 0.000000e+00 : f32
      %16 = vector.broadcast %cst_14 : f32 to vector<2x32xf32>
      %c0_15 = arith.constant 0 : index
      %c0_16 = arith.constant 0 : index
      %17 = vector.load %arg6[%c0_15, %c0_16] : memref<2x32xf32, #tpu.memory_space<vmem>>, vector<2x32xf32>
      tpu.vector_store %arg6[%c0_15, %c0_16], %16 {strides = array<i32>} : memref<2x32xf32, #tpu.memory_space<vmem>>, vector<2x32xf32>,
      %cst_17 = arith.constant 0.000000e+00 : f32
      %18 = vector.broadcast %cst_17 : f32 to vector<2x32xf32>
      %c0_18 = arith.constant 0 : index
      %c0_19 = arith.constant 0 : index
      %19 = vector.load %arg7[%c0_18, %c0_19] : memref<2x32xf32, #tpu.memory_space<vmem>>, vector<2x32xf32>
      tpu.vector_store %arg7[%c0_18, %c0_19], %18 {strides = array<i32>} : memref<2x32xf32, #tpu.memory_space<vmem>>, vector<2x32xf32>,
    } else {
    }
    %c0 = arith.constant 0 : index
    %c0_1 = arith.constant 0 : index
    %c0_2 = arith.constant 0 : index
    %3 = vector.load %arg2[%c0, %c0_1, %c0_2] : memref<2x8x32xf32, #tpu.memory_space<vmem>>, vector<2x8x32xf32>
    %c0_3 = arith.constant 0 : index
    %c0_4 = arith.constant 0 : index
    %4 = vector.load %arg6[%c0_3, %c0_4] : memref<2x32xf32, #tpu.memory_space<vmem>>, vector<2x32xf32>
    %cst = arith.constant dense<0.000000e+00> : vector<2x32xf32>
    %5 = vector.multi_reduction <add>, %3, %cst [1] : vector<2x8x32xf32> to vector<2x32xf32>
    %6 = arith.addf %4, %5 : vector<2x32xf32>
    %c0_5 = arith.constant 0 : index
    %c0_6 = arith.constant 0 : index
    %7 = vector.load %arg6[%c0_5, %c0_6] : memref<2x32xf32, #tpu.memory_space<vmem>>, vector<2x32xf32>
    tpu.vector_store %arg6[%c0_5, %c0_6], %6 {strides = array<i32>} : memref<2x32xf32, #tpu.memory_space<vmem>>, vector<2x32xf32>,
    %c0_7 = arith.constant 0 : index
    %c0_8 = arith.constant 0 : index
    %8 = vector.load %arg7[%c0_7, %c0_8] : memref<2x32xf32, #tpu.memory_space<vmem>>, vector<2x32xf32>
    %9 = arith.mulf %3, %3 : vector<2x8x32xf32>
    %cst_9 = arith.constant dense<0.000000e+00> : vector<2x32xf32>
    %10 = vector.multi_reduction <add>, %9, %cst_9 [1] : vector<2x8x32xf32> to vector<2x32xf32>
    %11 = arith.addf %8, %10 : vector<2x32xf32>
    %c0_10 = arith.constant 0 : index
    %c0_11 = arith.constant 0 : index
    %12 = vector.load %arg7[%c0_10, %c0_11] : memref<2x32xf32, #tpu.memory_space<vmem>>, vector<2x32xf32>
    tpu.vector_store %arg7[%c0_10, %c0_11], %11 {strides = array<i32>} : memref<2x32xf32, #tpu.memory_space<vmem>>, vector<2x32xf32>,
    %c0_i32_12 = arith.constant 0 : i32
    %13 = arith.cmpi eq, %arg1, %c0_i32_12 : i32
    %14 = arith.extui %13 : i1 to i32
    %c0_i32_13 = arith.constant 0 : i32
    %15 = arith.cmpi ne, %14, %c0_i32_13 : i32
    scf.if %15 {
      %c0_14 = arith.constant 0 : index
      %c0_15 = arith.constant 0 : index
      %16 = vector.load %arg6[%c0_14, %c0_15] : memref<2x32xf32, #tpu.memory_space<vmem>>, vector<2x32xf32>
      %cst_16 = arith.constant 1.250000e-01 : f32
      %17 = vector.broadcast %cst_16 : f32 to vector<2x32xf32>
      %18 = arith.mulf %16, %17 : vector<2x32xf32>
      %c0_17 = arith.constant 0 : index
      %c0_18 = arith.constant 0 : index
      %19 = vector.load %arg7[%c0_17, %c0_18] : memref<2x32xf32, #tpu.memory_space<vmem>>, vector<2x32xf32>
      %cst_19 = arith.constant 1.250000e-01 : f32
      %20 = vector.broadcast %cst_19 : f32 to vector<2x32xf32>
      %21 = arith.mulf %19, %20 : vector<2x32xf32>
      %22 = arith.mulf %18, %18 : vector<2x32xf32>
      %23 = arith.subf %21, %22 : vector<2x32xf32>
      %cst_20 = arith.constant 1.14285719 : f32
      %24 = vector.broadcast %cst_20 : f32 to vector<2x32xf32>
      %25 = arith.mulf %23, %24 : vector<2x32xf32>
      %cst_21 = arith.constant 0.000000e+00 : f32
      %26 = vector.broadcast %cst_21 : f32 to vector<2x32xf32>
      %27 = arith.maximumf %25, %26 : vector<2x32xf32>
      %28 = math.sqrt %27 : vector<2x32xf32>
      %29 = vector.shape_cast %18 : vector<2x32xf32> to vector<2x1x32xf32>
      %c0_22 = arith.constant 0 : index
      %c0_23 = arith.constant 0 : index
      %c0_24 = arith.constant 0 : index
      %30 = vector.load %arg3[%c0_22, %c0_23, %c0_24] : memref<2x1x32xf32, #tpu.memory_space<vmem>>, vector<2x1x32xf32>
      %31 = arith.addf %29, %30 : vector<2x1x32xf32>
      %c0_25 = arith.constant 0 : index
      %c0_26 = arith.constant 0 : index
      %c0_27 = arith.constant 0 : index
      %32 = vector.load %arg4[%c0_25, %c0_26, %c0_27] : memref<2x1x32xf32, #tpu.memory_space<vmem>>, vector<2x1x32xf32>
      tpu.vector_store %arg4[%c0_25, %c0_26, %c0_27], %31 {strides = array<i32>} : memref<2x1x32xf32, #tpu.memory_space<vmem>>, vector<2x1x32xf32>,
      %33 = vector.shape_cast %28 : vector<2x32xf32> to vector<2x1x32xf32>
      %cst_28 = arith.constant 9.99999974E-6 : f32
      %34 = vector.broadcast %cst_28 : f32 to vector<2x1x32xf32>
      %35 = arith.addf %33, %34 : vector<2x1x32xf32>
      %c0_29 = arith.constant 0 : index
      %c0_30 = arith.constant 0 : index
      %c0_31 = arith.constant 0 : index
      %36 = vector.load %arg5[%c0_29, %c0_30, %c0_31] : memref<2x1x32xf32, #tpu.memory_space<vmem>>, vector<2x1x32xf32>
      tpu.vector_store %arg5[%c0_29, %c0_30, %c0_31], %35 {strides = array<i32>} : memref<2x1x32xf32, #tpu.memory_space<vmem>>, vector<2x1x32xf32>,
    } else {
    }
    return
  }
  func.func @transform_0(%arg0: i32, %arg1: i32) -> (i32, i32, i32) {
    %c0_i32 = arith.constant 0 : i32
    %c0_i32_0 = arith.constant 0 : i32
    return %arg0, %arg1, %c0_i32 : i32, i32, i32
  }
  func.func @transform_1(%arg0: i32, %arg1: i32) -> (i32, i32, i32) {
    %c0_i32 = arith.constant 0 : i32
    %c0_i32_0 = arith.constant 0 : i32
    %c0_i32_1 = arith.constant 0 : i32
    return %arg0, %c0_i32, %c0_i32_0 : i32, i32, i32
  }
  func.func @transform_2(%arg0: i32, %arg1: i32) -> (i32, i32, i32) {
    %c0_i32 = arith.constant 0 : i32
    %c0_i32_0 = arith.constant 0 : i32
    %c0_i32_1 = arith.constant 0 : i32
    return %arg0, %c0_i32, %c0_i32_0 : i32, i32, i32
  }
  func.func @transform_3(%arg0: i32, %arg1: i32) -> (i32, i32, i32) {
    %c0_i32 = arith.constant 0 : i32
    %c0_i32_0 = arith.constant 0 : i32
    %c0_i32_1 = arith.constant 0 : i32
    return %arg0, %c0_i32, %c0_i32_0 : i32, i32, i32
  }
}

</mosaic_0001>

<bundles_post_ra>
// kernel: tpu_custom_call.1
= control target key start
LH: loop header
LB: loop body
LE: loop exit
PB: predicated region body
PF: predicated region fallthrough
CT: control target
= control target key end

     0   :  { %9 = vsyncpa [#allocation5], 0  ;;  %s365_s0 = inlined_call_operand.hbm [shape: f32[2,8,32], index: 0, kind: input, shape index: {}]   ;;  %s366_s1 = inlined_call_operand.vmem [shape: f32[2,1,32], index: 1, kind: input, shape index: {}]   ;;  %s367_s2 = inlined_call_operand.hbm [shape: f32[2,1,32], index: 2, kind: output, shape index: {0}]   ;;  %s368_s3 = inlined_call_operand.hbm [shape: f32[2,1,32], index: 3, kind: output, shape index: {1}]  }
   0x1   :  { %10 = vsyncpa [#allocation6], 0 }
   0x2   :  { %11 = vsyncpa [#allocation9], 0  ;;  %s280_s12 = smov [#allocation4]   ;;  %s208_s16 = scalar_lea.hbm %s365_s0, 256 }
   0x3   :  { %s17_s13 = sshll.u32 %s280_s12, 4  ;;  %p209_p0 = scmp.ne.s32.totalorder %s365_s0, %s208_s16  ;;  %s18_s13 = int_to_ptr.vmem [resolvable:$true] %s17_s13 }
   0x4   :  { %p212_p1 = scmp.lt.u32.totalorder %s208_s16, %s365_s0 }
   0x6   :  { %p214_p2 = pnand %p212_p1, %p209_p0 }
   0x8   :  { %217 = shalt.err (!%p214_p2)
}
   0x9   :  { %s218_s21 = scalar_lea.vmem %s18_s13, 256  ;;  %p223_p4 = scmp.lt.s32.totalorder %s18_s13, %s18_s13 }
   0xa   :  { %p219_p3 = scmp.ne.s32.totalorder %s18_s13, %s218_s21  ;;  %p224_p5 = scmp.lt.s32.totalorder %s218_s21, %s218_s21 }
   0xc   :  { %p225_p6 = por %p224_p5, %p223_p4 }
   0xe   :  { %p226_p7 = pnand %p225_p6, %p219_p3 }
  0x10   :  { %229 = shalt.err (!%p226_p7)
}
  0x11   :  { %s281_s22 = smov 128   ;;  %s282_s23 = smov 8  }
  0x12   :  { %23 = dma.hbm_to_vmem [thread:$0]  %s365_s0, 256, %s18_s13, [#allocation5], %s281_s22, %s281_s22, %s282_s23  }
  0x13   :  { %274 = dma.done.wait [#allocation5], 256  }
  0x14   :  { %275 = vsyncadd [#allocation5], 4294967040  ;;  %vm33_vm0 = vcmask 254976   ;;  %v283_v0 = vmov 0.0   ;;  %vm39_vm1 = vcmask 261120   ;;  %v36_v1 = vld [vmem:[#allocation4] sm:$0xff]  ;;  %v107_v39 = vlaneseq }
  0x15   :  { %34 = vst.msk [vmem:[#allocation2] sm:$0x3] %vm33_vm0, %v283_v0  ;;  %35 = vst.msk [vmem:[#allocation3] sm:$0x3] %vm33_vm0, %v283_v0  ;;  %v37_v2 = vld [vmem:[#allocation4 + $0x8] sm:$0xff]  ;;  %v40_v3 = vsel %vm39_vm1, %v36_v1, 0.0  ;;  %v63_v5 = vmul.f32 %v36_v1, %v36_v1 }
  0x16   :  { %v47_v4 = vsel %vm39_vm1, %v37_v2, 0.0  ;;  %v64_v6 = vmul.f32 %v37_v2, %v37_v2  ;;  %v41_v7 = vrot.slane %v40_v3, 4  ;;  %vm56_vm2 = vcmask 1041409   ;;  %v128_v51 = vld [vmem:[%s366_s1] sm:$0x1]  ;;  %s285_s29 = smov [#allocation7]  }
  0x17   :  { %v48_v8 = vrot.slane %v47_v4, 4  ;;  %v65_v9 = vsel %vm39_vm1, %v63_v5, 0.0  ;;  %v284_v37 = vmov 1966171168   ;;  %v108_v43 = vshrl.u32 %v107_v39, 7  ;;  %s169_s30 = sshll.u32 %s285_s29, 4  ;;  %s170_s30 = int_to_ptr.vmem [resolvable:$true] %s169_s30 }
  0x18   :  { %v72_v10 = vsel %vm39_vm1, %v64_v6, 0.0  ;;  %v42_v11 = vadd.f32 %v41_v7, %v40_v3  ;;  %v66_v13 = vrot.slane %v65_v9, 4  ;;  %v105_v38 = vunpack.c.l.s4 %v284_v37  ;;  %v129_v55 = vld [vmem:[%s366_s1 + $0x1] sm:$0x1]  ;;  %s230_s4 = scalar_lea.vmem %s170_s30, 32  ;;  %p235_p9 = scmp.lt.s32.totalorder %s170_s30, %s170_s30 }
  0x19   :  { %v49_v12 = vadd.f32 %v48_v8, %v47_v4  ;;  %v73_v14 = vrot.slane %v72_v10, 4  ;;  %vm132_vm3 = vcmask 253952   ;;  %p231_p8 = scmp.ne.s32.totalorder %s170_s30, %s230_s4  ;;  %p236_p10 = scmp.lt.s32.totalorder %s230_s4, %s230_s4 }
  0x1a   :  { %v43_v15 = vrot.slane %v42_v11, 2  ;;  %v67_v17 = vadd.f32 %v66_v13, %v65_v9  ;;  %v106_v42 = vunpack.c.0.s8 %v105_v38 }
  0x1b   :  { %v50_v16 = vrot.slane %v49_v12, 2  ;;  %v74_v18 = vadd.f32 %v73_v14, %v72_v10  ;;  %p237_p11 = por %p236_p10, %p235_p9 }
  0x1c   :  { %v44_v19 = vadd.f32 %v43_v15, %v42_v11  ;;  %v68_v21 = vrot.slane %v67_v17, 2  ;;  %v38_v27 = vld [vmem:[#allocation2] sm:$0x3]  ;;  %v62_v33 = vld [vmem:[#allocation3] sm:$0x3]  ;;  %v109_v44 = vsub.s32 %v106_v42, %v108_v43 }
  0x1d   :  { %v51_v20 = vadd.f32 %v50_v16, %v49_v12  ;;  %v75_v22 = vrot.slane %v74_v18, 2  ;;  %p238_p12 = pnand %p237_p11, %p231_p8 }
  0x1e   :  { %v45_v23 = vrot.slane %v44_v19, 1  ;;  %v69_v25 = vadd.f32 %v68_v21, %v67_v17 }
  0x1f   :  { %v52_v24 = vrot.slane %v51_v20, 1  ;;  %v76_v26 = vadd.f32 %v75_v22, %v74_v18 }
  0x20   :  { %v46_v28 = vadd.f32 %v45_v23, %v44_v19  ;;  %v70_v30 = vrot.slane %v69_v25, 1 }
  0x21   :  { %v53_v29 = vadd.f32 %v52_v24, %v51_v20  ;;  %v77_v31 = vrot.slane %v76_v26, 1 }
  0x22   :  { %v71_v34 = vadd.f32 %v70_v30, %v69_v25 }
  0x23   :  { %v57_v32 = vsel %vm56_vm2, %v53_v29, %v46_v28  ;;  %v78_v35 = vadd.f32 %v77_v31, %v76_v26 }
  0x24   :  { %v59_v36 = vadd.f32 %v57_v32, %v38_v27 }
  0x25   :  { %v81_v40 = vsel %vm56_vm2, %v78_v35, %v71_v34 }
  0x26   :  { %61 = vst.msk [vmem:[#allocation2] sm:$0x3] %vm33_vm0, %v59_v36  ;;  %v83_v41 = vadd.f32 %v81_v40, %v62_v33 }
  0x28   :  { %84 = vst.msk [vmem:[#allocation3] sm:$0x3] %vm33_vm0, %v83_v41 }
  0x2d   :  { %v88_v45 = vld [vmem:[#allocation2] sm:$0x3] }
  0x2e   :  { %v89_v46 = vmul.f32 0.125, %v88_v45 }
  0x2f   :  { %v90_v47 = vld [vmem:[#allocation3] sm:$0x3] }
  0x30   :  { %v91_v48 = vmul.f32 0.125, %v90_v47  ;;  %v92_v49 = vmul.f32 %v89_v46, %v89_v46  ;;  %v110_v50 = vrot.slane %v89_v46, %v109_v44 }
  0x32   :  { %v93_v52 = vsub.f32 %v91_v48, %v92_v49  ;;  %v118_v53 = vrot.slane %v110_v50, %v109_v44  ;;  %v111_v54 = vcombine.high %v110_v50, %v110_v50 }
  0x34   :  { %v94_v56 = vmul.f32 1.1428572, %v93_v52  ;;  %v130_v57 = vadd.f32 %v128_v51, %v118_v53  ;;  %v125_v58 = vrot.slane %v111_v54, %v109_v44 }
  0x36   :  { %v95_v59 = vmax.f32 %v94_v56, 0.0  ;;  %133 = vst.msk [vmem:[#allocation7] sm:$0x1] %vm132_vm3, %v130_v57  ;;  %v131_v60 = vadd.f32 %v129_v55, %v125_v58 }
  0x38   :  { %134 = vst.msk [vmem:[#allocation7 + $0x1] sm:$0x1] %vm132_vm3, %v131_v60  ;;  %206 = vrsqrt.f32 %v95_v59 }
  0x39   :  { %241 = shalt.err (!%p238_p12)
}
  0x3a   :  { %s242_s6 = scalar_lea.hbm %s367_s2, 32 }
  0x3b   :  { %p243_p13 = scmp.ne.s32.totalorder %s367_s2, %s242_s6  ;;  %p246_p0 = scmp.lt.u32.totalorder %s242_s6, %s367_s2 }
  0x3d   :  { %p248_p1 = pnand %p246_p0, %p243_p13 }
  0x3f   :  { %251 = shalt.err (!%p248_p1)
}
  0x40   :  { %s286_s11 = smov 16   ;;  %s287_s12 = smov 1   ;;  %vm98_vm4 = vcmp.eq.f32.partialorder %v95_v59, inf  ;;  %v101_v63 = vand.u32 2147483648, %v95_v59  ;;  %vm100_vm5 = vcmp.eq.f32.partialorder %v95_v59, 0.0 }
  0x41   :  { %175 = dma.vmem_to_hbm [thread:$0]  %s170_s30, 32, %s367_s2, [#allocation6], %s286_s11, %s286_s11, %s287_s12  }
  0x42   :  { %v207_v61 = vpop.eup %206  ;;  %s288_s15 = smov [#allocation8]  }
  0x43   :  { %v97_v62 = vmul.f32 %v207_v61, %v95_v59  ;;  %s181_s16 = sshll.u32 %s288_s15, 4  ;;  %s182_s16 = int_to_ptr.vmem [resolvable:$true] %s181_s16 }
  0x44   :  { %s252_s2 = scalar_lea.vmem %s182_s16, 32  ;;  %p257_p3 = scmp.lt.s32.totalorder %s182_s16, %s182_s16 }
  0x45   :  { %v99_v0 = vsel %vm98_vm4, %v95_v59, %v97_v62  ;;  %p253_p2 = scmp.ne.s32.totalorder %s182_s16, %s252_s2  ;;  %p258_p4 = scmp.lt.s32.totalorder %s252_s2, %s252_s2 }
  0x46   :  { %v102_v1 = vsel %vm100_vm5, %v101_v63, %v99_v0 }
  0x47   :  { %v142_v2 = vrot.slane %v102_v1, %v109_v44  ;;  %p259_p5 = por %p258_p4, %p257_p3 }
  0x49   :  { %v150_v3 = vrot.slane %v142_v2, %v109_v44  ;;  %v143_v4 = vcombine.high %v142_v2, %v142_v2  ;;  %p260_p6 = pnand %p259_p5, %p253_p2 }
  0x4b   :  { %v160_v5 = vadd.f32 1e-05, %v150_v3  ;;  %v157_v6 = vrot.slane %v143_v4, %v109_v44 }
  0x4d   :  { %162 = vst.msk [vmem:[#allocation8] sm:$0x1] %vm132_vm3, %v160_v5  ;;  %v161_v7 = vadd.f32 1e-05, %v157_v6 }
  0x4f   :  { %163 = vst.msk [vmem:[#allocation8 + $0x1] sm:$0x1] %vm132_vm3, %v161_v7 }
  0x50   :  { %263 = shalt.err (!%p260_p6)
}
  0x51   :  { %s264_s19 = scalar_lea.hbm %s368_s3, 32 }
  0x52   :  { %p265_p7 = scmp.ne.s32.totalorder %s368_s3, %s264_s19  ;;  %p268_p8 = scmp.lt.u32.totalorder %s264_s19, %s368_s3 }
  0x54   :  { %p270_p9 = pnand %p268_p8, %p265_p7 }
  0x56   :  { %273 = shalt.err (!%p270_p9)
}
  0x57   :  { %187 = dma.vmem_to_hbm [thread:$0]  %s182_s16, 32, %s368_s3, [#allocation9], %s286_s11, %s286_s11, %s287_s12  }
  0x58   :  { %276 = dma.done.wait [#allocation6], 32  }
  0x59   :  { %277 = vsyncadd [#allocation6], 4294967264 }
  0x5a   :  { %278 = dma.done.wait [#allocation9], 32  }
  0x5b   :  { %279 = vsyncadd [#allocation9], 4294967264 }
  0x5c   :  { %194 = vsyncpa [#allocation5], 1 }
  0x5d   :  { %195 = vsyncpa [#allocation6], 1 }
  0x5e   :  { %196 = vsyncpa [#allocation9], 1 }

</bundles_post_ra>
